<compile_context>
chip_gen: v7x
topology: tpu7x:2x2x1
jax: 0.10.0
libtpu: 0.0.40
codegen_flags: <defaults>
</compile_context>

<pallas_src>
import functools
import math

import jax
import jax.numpy as jnp
from jax import lax
from jax.experimental import pallas as pl
from jax.experimental.pallas import tpu as pltpu

STEPS = 2
ALPHA = 0.5   # surrogate-gradient window width (backward only; unused in fwd)
TAU = 0.25
VTH = 0.2


def _lif_kernel(x_ref, out_ref, *, steps):
    # x_ref / out_ref: (tr, L) blocks in the NATIVE interleaved layout:
    # lane j holds neuron j // steps at time j % steps (L % steps == 0, so a
    # neuron's time samples never straddle a row).
    x = x_ref[...].astype(jnp.float32)
    tr, L = x.shape
    lane = lax.broadcasted_iota(jnp.int32, (tr, L), 1)

    # Roll-convention-agnostic "previous lane" shift: exactly one of
    # roll(+1) / roll(L-1) maps lane j -> j-1; pick it with a rolled iota so
    # correctness does not depend on the rotate direction. The extra roll and
    # selects are XLU/VPU filler far under the HBM roofline.
    prev_idx = (lane + (L - 1)) % L
    plus_one_is_prev = pltpu.roll(lane, shift=1, axis=1) == prev_idx

    def prev_lane(v):
        return jnp.where(plus_one_is_prev,
                         pltpu.roll(v, shift=1, axis=1),
                         pltpu.roll(v, shift=L - 1, axis=1))

    t_of_lane = lane % steps            # time index carried by each lane

    # t = 0 lanes: u_0 = TAU * 0 * (1 - 0) + x_0 = x_0 (other lanes fixed below).
    u = x
    for t in range(1, steps):           # steps is tiny & static -> fully unrolled
        u_prev = prev_lane(u)           # same neuron, time t-1 (wraparound lanes masked)
        o_prev = (u_prev - VTH) > 0.0
        # TAU * u * (1 - o) + x  ==  x where o == 1,  TAU * u + x where o == 0
        u_t = jnp.where(o_prev, x, TAU * u_prev + x)
        u = jnp.where(t_of_lane == t, u_t, u)

    spikes = jnp.where((u - VTH) > 0.0, 1.0, 0.0)   # SpikeAct forward: 1{u - VTH > 0}
    out_ref[...] = spikes.astype(out_ref.dtype)     # written back in native layout


def lif_spike(x, steps=STEPS, *, out_dtype=jnp.bfloat16,
              target_block_bytes=4 * 1024 * 1024):
    """LIFSpike forward. x: (..., steps) -> binary spikes (0/1), same shape.

    out_dtype defaults to bfloat16 (spikes are exactly representable) to halve
    HBM writeback; pass out_dtype=x.dtype (or int8) to override.
    """
    assert x.shape[-1] == steps, (x.shape, steps)
    in_dtype = jnp.dtype(x.dtype)
    out_dtype = jnp.dtype(out_dtype)
    orig_shape = x.shape
    total = x.size                       # neurons * steps, in native memory order

    # Lane width: multiple of lcm(128, steps) so each neuron's time samples
    # stay inside one row; prefer the largest width that divides `total`
    # (typical conv shapes are highly composite -> no padding, no copies).
    base = 128 * steps // math.gcd(128, steps)
    cands = [c for c in (1024, 512, 256, 128) if c % base == 0]
    L = next((c for c in cands if total % c == 0 and total // c >= 8), None)
    if L is None:
        L = next((c for c in cands if total % c == 0), None)
    pad = 0
    if L is None:
        L = base
        pad = (-total) % L
    x_flat = x.reshape(-1)               # free: native layout, no transpose
    if pad:
        # TODO(synk): rare path (total not a multiple of 128*steps) costs one
        # extra HBM pass through jnp.pad.
        x_flat = jnp.pad(x_flat, (0, pad))
    R = (total + pad) // L
    x2 = x_flat.reshape(R, L)

    # Generation-aware VMEM cap (v7x: 64 MiB physical; v5e/v6e: 128 MiB).
    vmem_cap = 48 << 20
    try:
        vmem_cap = min(vmem_cap, (pltpu.get_tpu_info().vmem_capacity_bytes * 3) // 4)
    except Exception:
        pass

    # Rows per block: ~target_block_bytes of input per block, rounded to the
    # packed sublane multiple of the narrower dtype (8 f32 / 16 bf16 / 32 i8)
    # so the narrow-dtype writeback stays an unmasked, fully-packed tile.
    sub = max(8, 32 // in_dtype.itemsize, 32 // out_dtype.itemsize)
    if R <= sub:
        tr = R                           # single full-extent block (always legal)
    else:
        tr = max((target_block_bytes // (L * in_dtype.itemsize)) // sub, 1) * sub
        # >= 4 parallel blocks whenever R allows it -> >= 2 blocks per v7x
        # TensorCore (keeps DMA overlapped on both cores; no-op on 1-TC chips).
        min_blocks = 4
        tr_cap = max(pl.cdiv(pl.cdiv(R, min_blocks), sub) * sub, sub)
        tr = min(tr, tr_cap)

    # Per-block VMEM: double-buffered in/out blocks + f32 intermediates
    # (x cast, u, rolled copies, masks) materialized across the unrolled loop.
    def _vmem_need(rows):
        blk = rows * L
        return (2 * blk * (in_dtype.itemsize + out_dtype.itemsize)
                + (steps + 3) * blk * 4)

    while tr > sub and _vmem_need(tr) + (4 << 20) > vmem_cap:
        tr = max(((tr // 2) // sub) * sub, sub)

    grid = (pl.cdiv(R, tr),)
    vmem_limit = int(min(max(_vmem_need(tr) + (4 << 20), 32 << 20), vmem_cap))

    out2 = pl.pallas_call(
        functools.partial(_lif_kernel, steps=steps),
        out_shape=jax.ShapeDtypeStruct((R, L), out_dtype),
        grid_spec=pltpu.PrefetchScalarGridSpec(
            num_scalar_prefetch=0,
            grid=grid,
            in_specs=[pl.BlockSpec((tr, L), lambda i: (i, 0))],
            out_specs=pl.BlockSpec((tr, L), lambda i: (i, 0)),
        ),
        compiler_params=pltpu.CompilerParams(
            dimension_semantics=("parallel",),
            vmem_limit_bytes=vmem_limit,
        ),
    )(x2)

    out_flat = out2.reshape(-1)
    if pad:
        out_flat = out_flat[:total]
    return out_flat.reshape(orig_shape)  # free: already in the native layout


def _lif_ref(x, steps=STEPS):
    """Pure-JAX reference matching the PyTorch forward."""
    u = jnp.zeros(x.shape[:-1], jnp.float32)
    o = jnp.zeros(x.shape[:-1], jnp.float32)
    outs = []
    for t in range(steps):
        u = TAU * u * (1.0 - o) + x[..., t].astype(jnp.float32)
        o = (u - VTH > 0.0).astype(jnp.float32)
        outs.append(o)
    return jnp.stack(outs, axis=-1)


if __name__ == "__main__":
    key = jax.random.PRNGKey(0)
    k0, k1, k2 = jax.random.split(key, 3)

    # (N, C, H, W, T) = (2, 4, 16, 16, STEPS): single-block path.
    x = jax.random.normal(k0, (2, 4, 16, 16, STEPS), dtype=jnp.float32)
    out = jax.block_until_ready(lif_spike(x))
    assert out.shape == x.shape
    assert jnp.array_equal(out.astype(jnp.float32), _lif_ref(x)), "mismatch (case 1)"

    # Larger input -> multiple "parallel" grid blocks (megacore path).
    x2 = jax.random.normal(k1, (4, 8, 16, 16, STEPS), dtype=jnp.float32)
    out2 = jax.block_until_ready(lif_spike(x2))
    assert jnp.array_equal(out2.astype(jnp.float32), _lif_ref(x2)), "mismatch (case 2)"

    # bf16 input -> bf16 spikes (native layout, narrow read + narrow writeback).
    x3 = jax.random.normal(k2, (2, 4, 16, 16, STEPS), dtype=jnp.float32).astype(jnp.bfloat16)
    out3 = jax.block_until_ready(lif_spike(x3))
    assert jnp.array_equal(out3.astype(jnp.float32), _lif_ref(x3)), "mismatch (case 3)"

    print("KERNEL_OK")
</pallas_src>

<mosaic_0001>
module attributes {stable_mosaic.version = 11 : i64} {
  func.func @_lif_kernel(%arg0: i32, %arg1: memref<8x512xf32, #tpu.memory_space<vmem>>, %arg2: memref<8x512xbf16, #tpu.memory_space<vmem>>) attributes {dimension_semantics = [#tpu.dimension_semantics<parallel>], iteration_bounds = array<i64: 1>, scalar_prefetch = 0 : i64, scratch_operands = 0 : i64, tpu.core_type = #tpu.core_type<tc>, window_params = [{transform_indices = @transform_0, window_bounds = array<i64: 8, 512>}, {transform_indices = @transform_1, window_bounds = array<i64: 8, 512>}]} {
    %c0 = arith.constant 0 : index
    %c0_0 = arith.constant 0 : index
    %0 = vector.load %arg1[%c0, %c0_0] : memref<8x512xf32, #tpu.memory_space<vmem>>, vector<8x512xf32>
    %1 = tpu.iota {dimensions = array<i32: 1>} : vector<8x512xi32>
    %c511_i32 = arith.constant 511 : i32
    %2 = vector.broadcast %c511_i32 : i32 to vector<8x512xi32>
    %3 = arith.addi %1, %2 : vector<8x512xi32>
    %c512_i32 = arith.constant 512 : i32
    %c0_i32 = arith.constant 0 : i32
    %4 = arith.cmpi eq, %c512_i32, %c0_i32 : i32
    %c1_i32 = arith.constant 1 : i32
    %5 = arith.select %4, %c1_i32, %c512_i32 : i32
    %6 = vector.broadcast %5 : i32 to vector<8x512xi32>
    %7 = arith.remsi %3, %6 : vector<8x512xi32>
    %c0_i32_1 = arith.constant 0 : i32
    %8 = vector.broadcast %c0_i32_1 : i32 to vector<8x512xi32>
    %9 = arith.cmpi ne, %7, %8 : vector<8x512xi32>
    %c0_i32_2 = arith.constant 0 : i32
    %10 = vector.broadcast %c0_i32_2 : i32 to vector<8x512xi32>
    %11 = arith.cmpi slt, %7, %10 : vector<8x512xi32>
    %c0_i32_3 = arith.constant 0 : i32
    %12 = arith.cmpi slt, %5, %c0_i32_3 : i32
    %13 = vector.broadcast %12 : i1 to vector<8x512xi1>
    %14 = vector.broadcast %13 : vector<8x512xi1> to vector<8x512xi1>
    %15 = arith.xori %11, %14 : vector<8x512xi1>
    %16 = arith.andi %15, %9 : vector<8x512xi1>
    %17 = vector.broadcast %5 : i32 to vector<8x512xi32>
    %18 = arith.addi %7, %17 : vector<8x512xi32>
    %19 = arith.select %16, %18, %7 : vector<8x512xi1>, vector<8x512xi32>
    %c1_i32_4 = arith.constant 1 : i32
    %20 = tpu.dynamic_rotate %1 by %c1_i32_4 dim 1 : vector<8x512xi32>, i32 -> vector<8x512xi32>
    %21 = arith.cmpi eq, %20, %19 : vector<8x512xi32>
    %c2_i32 = arith.constant 2 : i32
    %c0_i32_5 = arith.constant 0 : i32
    %22 = arith.cmpi eq, %c2_i32, %c0_i32_5 : i32
    %c1_i32_6 = arith.constant 1 : i32
    %23 = arith.select %22, %c1_i32_6, %c2_i32 : i32
    %24 = vector.broadcast %23 : i32 to vector<8x512xi32>
    %25 = arith.remsi %1, %24 : vector<8x512xi32>
    %c0_i32_7 = arith.constant 0 : i32
    %26 = vector.broadcast %c0_i32_7 : i32 to vector<8x512xi32>
    %27 = arith.cmpi ne, %25, %26 : vector<8x512xi32>
    %c0_i32_8 = arith.constant 0 : i32
    %28 = vector.broadcast %c0_i32_8 : i32 to vector<8x512xi32>
    %29 = arith.cmpi slt, %25, %28 : vector<8x512xi32>
    %c0_i32_9 = arith.constant 0 : i32
    %30 = arith.cmpi slt, %23, %c0_i32_9 : i32
    %31 = vector.broadcast %30 : i1 to vector<8x512xi1>
    %32 = vector.broadcast %31 : vector<8x512xi1> to vector<8x512xi1>
    %33 = arith.xori %29, %32 : vector<8x512xi1>
    %34 = arith.andi %33, %27 : vector<8x512xi1>
    %35 = vector.broadcast %23 : i32 to vector<8x512xi32>
    %36 = arith.addi %25, %35 : vector<8x512xi32>
    %37 = arith.select %34, %36, %25 : vector<8x512xi1>, vector<8x512xi32>
    %c1_i32_10 = arith.constant 1 : i32
    %38 = tpu.dynamic_rotate %0 by %c1_i32_10 dim 1 : vector<8x512xf32>, i32 -> vector<8x512xf32>
    %c511_i32_11 = arith.constant 511 : i32
    %39 = tpu.dynamic_rotate %0 by %c511_i32_11 dim 1 : vector<8x512xf32>, i32 -> vector<8x512xf32>
    %40 = arith.select %21, %38, %39 : vector<8x512xi1>, vector<8x512xf32>
    %cst = arith.constant 2.000000e-01 : f32
    %41 = vector.broadcast %cst : f32 to vector<8x512xf32>
    %42 = arith.subf %40, %41 : vector<8x512xf32>
    %cst_12 = arith.constant 0.000000e+00 : f32
    %43 = vector.broadcast %cst_12 : f32 to vector<8x512xf32>
    %44 = arith.cmpf ogt, %42, %43 : vector<8x512xf32>
    %cst_13 = arith.constant 2.500000e-01 : f32
    %45 = vector.broadcast %cst_13 : f32 to vector<8x512xf32>
    %46 = arith.mulf %45, %40 : vector<8x512xf32>
    %47 = arith.addf %46, %0 : vector<8x512xf32>
    %48 = arith.select %44, %0, %47 : vector<8x512xi1>, vector<8x512xf32>
    %c1_i32_14 = arith.constant 1 : i32
    %49 = vector.broadcast %c1_i32_14 : i32 to vector<8x512xi32>
    %50 = arith.cmpi eq, %37, %49 : vector<8x512xi32>
    %51 = arith.select %50, %48, %0 : vector<8x512xi1>, vector<8x512xf32>
    %cst_15 = arith.constant 2.000000e-01 : f32
    %52 = vector.broadcast %cst_15 : f32 to vector<8x512xf32>
    %53 = arith.subf %51, %52 : vector<8x512xf32>
    %cst_16 = arith.constant 0.000000e+00 : f32
    %54 = vector.broadcast %cst_16 : f32 to vector<8x512xf32>
    %55 = arith.cmpf ogt, %53, %54 : vector<8x512xf32>
    %cst_17 = arith.constant 1.000000e+00 : f32
    %cst_18 = arith.constant 0.000000e+00 : f32
    %56 = vector.broadcast %cst_17 : f32 to vector<8x512xf32>
    %57 = vector.broadcast %cst_18 : f32 to vector<8x512xf32>
    %58 = arith.select %55, %56, %57 : vector<8x512xi1>, vector<8x512xf32>
    %59 = arith.truncf %58 : vector<8x512xf32> to vector<8x512xbf16>
    %c0_19 = arith.constant 0 : index
    %c0_20 = arith.constant 0 : index
    %60 = vector.load %arg2[%c0_19, %c0_20] : memref<8x512xbf16, #tpu.memory_space<vmem>>, vector<8x512xbf16>
    tpu.vector_store %arg2[%c0_19, %c0_20], %59 {strides = array<i32>} : memref<8x512xbf16, #tpu.memory_space<vmem>>, vector<8x512xbf16>,
    return
  }
  func.func @transform_0(%arg0: i32) -> (i32, i32) {
    %c0_i32 = arith.constant 0 : i32
    %c0_i32_0 = arith.constant 0 : i32
    return %arg0, %c0_i32 : i32, i32
  }
  func.func @transform_1(%arg0: i32) -> (i32, i32) {
    %c0_i32 = arith.constant 0 : i32
    %c0_i32_0 = arith.constant 0 : i32
    return %arg0, %c0_i32 : i32, i32
  }
}

</mosaic_0001>

<bundles_post_ra>
// kernel: tpu_custom_call.1
= control target key start
LH: loop header
LB: loop body
LE: loop exit
PB: predicated region body
PF: predicated region fallthrough
CT: control target
= control target key end

     0   :  { %6 = vsyncpa [#allocation3], 0  ;;  %s457_s0 = inlined_call_operand.hbm [shape: f32[8,512], index: 0, kind: input, shape index: {}]   ;;  %s458_s1 = inlined_call_operand.hbm [shape: bf16[8,512], index: 1, kind: output, shape index: {}]  }
   0x1   :  { %7 = vsyncpa [#allocation4], 0  ;;  %s314_s6 = smov [#allocation2]   ;;  %s266_s10 = scalar_lea.hbm %s457_s0, 512 }
   0x2   :  { %s14_s7 = sshll.u32 %s314_s6, 4  ;;  %p267_p0 = scmp.ne.s32.totalorder %s457_s0, %s266_s10  ;;  %s15_s7 = int_to_ptr.vmem [resolvable:$true] %s14_s7 }
   0x3   :  { %p270_p1 = scmp.lt.u32.totalorder %s266_s10, %s457_s0 }
   0x5   :  { %p272_p2 = pnand %p270_p1, %p267_p0 }
   0x7   :  { %275 = shalt.err (!%p272_p2)
}
   0x8   :  { %s276_s15 = scalar_lea.vmem %s15_s7, 512  ;;  %p281_p4 = scmp.lt.s32.totalorder %s15_s7, %s15_s7 }
   0x9   :  { %p277_p3 = scmp.ne.s32.totalorder %s15_s7, %s276_s15  ;;  %p282_p5 = scmp.lt.s32.totalorder %s276_s15, %s276_s15 }
   0xb   :  { %p283_p6 = por %p282_p5, %p281_p4 }
   0xd   :  { %p284_p7 = pnand %p283_p6, %p277_p3 }
   0xf   :  { %287 = shalt.err (!%p284_p7)
}
  0x10   :  { %17 = dma.hbm_to_vmem [thread:$0]  %s457_s0, 512, %s15_s7, [#allocation3]   ;;  %v25_v0 = vlaneseq }
  0x11   :  { %310 = dma.done.wait [#allocation3], 512  }
  0x12   :  { %311 = vsyncadd [#allocation3], 4294966784  ;;  %v341_v1 = vand.u32 127, %v25_v0  ;;  %s315_s18 = smov 1   ;;  %v347_v5 = vld [vmem:[#allocation2] sm:$0xff]  ;;  %v349_v6 = vld [vmem:[#allocation2 + $0x8] sm:$0xff] }
  0x13   :  { %v352_v7 = vld [vmem:[#allocation2 + $0x10] sm:$0xff]  ;;  %v355_v8 = vld [vmem:[#allocation2 + $0x18] sm:$0xff]  ;;  %s316_s0 = smov 127   ;;  %s318_s19 = smov [#allocation5]  }
  0x14   :  { %82 = vrot.lane.b32.xlu0 %v341_v1, %s315_s18  ;;  %v28_v2 = vadd.s32 256, %v341_v1  ;;  %v27_v3 = vadd.s32 128, %v341_v1  ;;  %v29_v4 = vadd.s32 384, %v341_v1  ;;  %vm90_vm0 = vcmp.lt.s32.totalorder %v341_v1, 1  ;;  %s240_s20 = sshll.u32 %s318_s19, 4  ;;  %s241_s20 = int_to_ptr.vmem [resolvable:$true] %s240_s20 }
  0x15   :  { %v30_v27 = vadd.s32 511, %v341_v1  ;;  %vm167_vm4 = vcmp.lt.s32.totalorder %v341_v1, 127  ;;  %v103_v37 = vand.u32 1, %v341_v1  ;;  %s288_s21 = scalar_lea.vmem %s241_s20, 256  ;;  %p293_p9 = scmp.lt.s32.totalorder %s241_s20, %s241_s20 }
  0x16   :  { %86 = vrot.lane.b32.xlu1 %v28_v2, %s315_s18  ;;  %v32_v9 = vadd.s32 511, %v28_v2  ;;  %v31_v10 = vadd.s32 511, %v27_v3  ;;  %v33_v12 = vadd.s32 511, %v29_v4  ;;  %v117_v31 = vand.u32 1, %v28_v2  ;;  %p289_p8 = scmp.ne.s32.totalorder %s241_s20, %s288_s21  ;;  %p294_p10 = scmp.lt.s32.totalorder %s288_s21, %s288_s21 }
  0x17   :  { %v38_v30 = vand.u32 511, %v30_v27  ;;  %v110_v34 = vand.u32 1, %v27_v3  ;;  %v124_v35 = vand.u32 1, %v29_v4  ;;  %vm409_vm9 = vcmp.eq.s32.totalorder %v103_v37, 1 }
  0x18   :  { %84 = vrot.lane.b32.xlu0 %v27_v3, %s315_s18  ;;  %v52_v14 = vand.u32 511, %v32_v9  ;;  %v45_v15 = vand.u32 511, %v31_v10  ;;  %v59_v17 = vand.u32 511, %v33_v12  ;;  %vm391_vm6 = vcmp.eq.s32.totalorder %v117_v31, 1  ;;  %p295_p11 = por %p294_p10, %p293_p9 }
  0x19   :  { %vm399_vm7 = vcmp.eq.s32.totalorder %v110_v34, 1  ;;  %vm403_vm8 = vcmp.eq.s32.totalorder %v124_v35, 1 }
  0x1a   :  { %88 = vrot.lane.b32.xlu1 %v29_v4, %s315_s18  ;;  %p296_p12 = pnand %p295_p11, %p289_p8 }
  0x1c   :  { %147 = vrot.lane.b32.xlu0 %v347_v5, %s315_s18 }
  0x1e   :  { %149 = vrot.lane.b32.xlu1 %v349_v6, %s315_s18 }
  0x20   :  { %151 = vrot.lane.b32.xlu0 %v352_v7, %s315_s18 }
  0x22   :  { %153 = vrot.lane.b32.xlu1 %v355_v8, %s315_s18 }
  0x24   :  { %159 = vrot.lane.b32.xlu0 %v347_v5, %s316_s0 }
  0x26   :  { %161 = vrot.lane.b32.xlu1 %v349_v6, %s316_s0 }
  0x28   :  { %163 = vrot.lane.b32.xlu0 %v352_v7, %s316_s0 }
  0x2a   :  { %165 = vrot.lane.b32.xlu1 %v355_v8, %s316_s0 }
  0x86   :  { %v83_v11 = vpop.permute.xlu0 %82 }
  0x88   :  { %v87_v13 = vpop.permute.xlu1 %86 }
  0x8a   :  { %v85_v16 = vpop.permute.xlu0 %84 }
  0x8b   :  { %v92_v18 = vsel %vm90_vm0, %v85_v16, %v87_v13  ;;  %v93_v19 = vsel %vm90_vm0, %v83_v11, %v85_v16 }
  0x8c   :  { %vm368_vm1 = vcmp.eq.s32.totalorder %v93_v19, %v45_v15  ;;  %vm372_vm2 = vcmp.eq.s32.totalorder %v92_v18, %v52_v14  ;;  %v89_v22 = vpop.permute.xlu1 %88 }
  0x8d   :  { %v91_v23 = vsel %vm90_vm0, %v87_v13, %v89_v22  ;;  %v94_v32 = vsel %vm90_vm0, %v89_v22, %v83_v11 }
  0x8e   :  { %vm378_vm3 = vcmp.eq.s32.totalorder %v91_v23, %v59_v17  ;;  %v148_v25 = vpop.permute.xlu0 %147  ;;  %vm95_vm5 = vcmp.eq.s32.totalorder %v94_v32, %v38_v30 }
  0x90   :  { %v150_v26 = vpop.permute.xlu1 %149 }
  0x91   :  { %v157_v43 = vsel %vm90_vm0, %v148_v25, %v150_v26 }
  0x92   :  { %v152_v28 = vpop.permute.xlu0 %151 }
  0x93   :  { %v156_v55 = vsel %vm90_vm0, %v150_v26, %v152_v28 }
  0x94   :  { %v154_v29 = vpop.permute.xlu1 %153 }
  0x95   :  { %v158_v38 = vsel %vm90_vm0, %v154_v29, %v148_v25  ;;  %v155_v56 = vsel %vm90_vm0, %v152_v28, %v154_v29 }
  0x96   :  { %v160_v33 = vpop.permute.xlu0 %159 }
  0x98   :  { %v162_v36 = vpop.permute.xlu1 %161 }
  0x99   :  { %v170_v39 = vsel %vm167_vm4, %v160_v33, %v162_v36 }
  0x9a   :  { %v172_v41 = vsel %vm95_vm5, %v158_v38, %v170_v39  ;;  %v164_v42 = vpop.permute.xlu0 %163 }
  0x9b   :  { %v249_v44 = vadd.f32 -0.2, %v172_v41  ;;  %v184_v45 = vmul.f32 0.25, %v172_v41  ;;  %v169_v46 = vsel %vm167_vm4, %v162_v36, %v164_v42 }
  0x9c   :  { %v173_v49 = vsel %vm368_vm1, %v157_v43, %v169_v46  ;;  %v166_v50 = vpop.permute.xlu1 %165 }
  0x9d   :  { %vm180_vm10 = vcmp.gt.f32.partialorder %v249_v44, 0.0  ;;  %v188_v52 = vadd.f32 %v184_v45, %v347_v5  ;;  %v250_v53 = vadd.f32 -0.2, %v173_v49  ;;  %v185_v54 = vmul.f32 0.25, %v173_v49 }
  0x9e   :  { %v168_v57 = vsel %vm167_vm4, %v164_v42, %v166_v50  ;;  %v171_v58 = vsel %vm167_vm4, %v166_v50, %v160_v33 }
  0x9f   :  { %v192_v59 = vsel %vm180_vm10, %v347_v5, %v188_v52  ;;  %vm181_vm11 = vcmp.gt.f32.partialorder %v250_v53, 0.0  ;;  %v189_v60 = vadd.f32 %v185_v54, %v349_v6  ;;  %v174_v61 = vsel %vm372_vm2, %v156_v55, %v168_v57 }
  0xa0   :  { %v175_v62 = vsel %vm378_vm3, %v155_v56, %v171_v58  ;;  %v251_v63 = vadd.f32 -0.2, %v174_v61  ;;  %v186_v0 = vmul.f32 0.25, %v174_v61  ;;  %v200_v2 = vsel %vm409_vm9, %v192_v59, %v347_v5 }
  0xa1   :  { %v193_v1 = vsel %vm181_vm11, %v349_v6, %v189_v60  ;;  %v252_v3 = vadd.f32 -0.2, %v175_v62  ;;  %v187_v4 = vmul.f32 0.25, %v175_v62  ;;  %v253_v9 = vadd.f32 -0.2, %v200_v2 }
  0xa2   :  { %vm182_vm12 = vcmp.gt.f32.partialorder %v251_v63, 0.0  ;;  %v190_v10 = vadd.f32 %v186_v0, %v352_v7  ;;  %v201_v11 = vsel %vm399_vm7, %v193_v1, %v349_v6  ;;  %v317_v6 = vmov 0.0  }
  0xa3   :  { %vm183_vm13 = vcmp.gt.f32.partialorder %v252_v3, 0.0  ;;  %v191_v12 = vadd.f32 %v187_v4, %v355_v8  ;;  %v254_v13 = vadd.f32 -0.2, %v201_v11  ;;  %vm208_vm14 = vcmp.gt.f32.partialorder %v253_v9, 0.0 }
  0xa4   :  { %v194_v14 = vsel %vm182_vm12, %v352_v7, %v190_v10  ;;  %v212_v18 = vsel %vm208_vm14, 1.0, %v317_v6 }
  0xa5   :  { %v195_v5 = vsel %vm183_vm13, %v355_v8, %v191_v12  ;;  %v202_v15 = vsel %vm391_vm6, %v194_v14, %v352_v7  ;;  %vm209_vm15 = vcmp.gt.f32.partialorder %v254_v13, 0.0 }
  0xa6   :  { %v203_v16 = vsel %vm403_vm8, %v195_v5, %v355_v8  ;;  %v255_v17 = vadd.f32 -0.2, %v202_v15  ;;  %v213_v19 = vsel %vm209_vm15, 1.0, %v317_v6 }
  0xa7   :  { %v256_v20 = vadd.f32 -0.2, %v203_v16  ;;  %v259_v21 = vpack.c.bf16 %v213_v19, %v212_v18 }
  0xa8   :  { %vm210_vm0 = vcmp.gt.f32.partialorder %v255_v17, 0.0 }
  0xa9   :  { %vm211_vm1 = vcmp.gt.f32.partialorder %v256_v20, 0.0  ;;  %v214_v22 = vsel %vm210_vm0, 1.0, %v317_v6  ;;  %232 = vst [vmem:[#allocation5] sm:$0xff] %v259_v21 }
  0xaa   :  { %v215_v23 = vsel %vm211_vm1, 1.0, %v317_v6 }
  0xab   :  { %v260_v24 = vpack.c.bf16 %v215_v23, %v214_v22 }
  0xad   :  { %233 = vst [vmem:[#allocation5 + $0x8] sm:$0xff] %v260_v24 }
  0xae   :  { %299 = shalt.err (!%p296_p12)
}
  0xaf   :  { %s300_s24 = scalar_lea.hbm %s458_s1, 256 }
  0xb0   :  { %p301_p13 = scmp.ne.s32.totalorder %s458_s1, %s300_s24  ;;  %p304_p0 = scmp.lt.u32.totalorder %s300_s24, %s458_s1 }
  0xb2   :  { %p306_p1 = pnand %p304_p0, %p301_p13 }
  0xb4   :  { %309 = shalt.err (!%p306_p1)
}
  0xb5   :  { %243 = dma.vmem_to_hbm [thread:$0]  %s241_s20, 256, %s458_s1, [#allocation4]  }
  0xb6   :  { %312 = dma.done.wait [#allocation4], 256  }
  0xb7   :  { %313 = vsyncadd [#allocation4], 4294967040 }
  0xb8   :  { %247 = vsyncpa [#allocation3], 1 }
  0xb9   :  { %248 = vsyncpa [#allocation4], 1 }

</bundles_post_ra>
